<compile_context>
chip_gen: v6e
topology: v6e:2x2x1
jax: 0.10.0
libtpu: 0.0.40
codegen_flags: <defaults>
</compile_context>

<pallas_src>
import functools

import jax
import jax.numpy as jnp
from jax.experimental import pallas as pl
from jax.experimental.pallas import tpu as pltpu

BN_EPS = 1e-5  # torch.nn.BatchNorm1d default eps


def _cross_copy_sum(row, k, d):
    """Sum a (1, k*d) per-(copy, channel) row over the k copy-groups.

    Returns a (1, k*d) row where every lane already holds its channel's total,
    i.e. the result is pre-broadcast across the k groups.  Uses XLU lane
    rotations (pltpu.roll), staying off the VPU/MXU critical path.
    """
    tot = row
    for m in range(1, k):
        tot = tot + pltpu.roll(row, shift=m * d, axis=1)
    return tot


def _bn_scale_shift(z, gamma_row, beta_row, k, d, count):
    """Training-mode BatchNorm1d (biased var), single pass: returns (scale, shift) rows."""
    inv_cnt = 1.0 / count
    s = jnp.sum(z, axis=0, keepdims=True)            # (1, k*d) per (copy, channel)
    s2 = jnp.sum(z * z, axis=0, keepdims=True)
    tot = _cross_copy_sum(s, k, d)
    tot2 = _cross_copy_sum(s2, k, d)
    mean = tot * inv_cnt
    var = tot2 * inv_cnt - mean * mean               # biased variance (training mode)
    scale = gamma_row * jax.lax.rsqrt(var + BN_EPS)
    shift = beta_row - mean * scale
    return scale, shift


def _gnn3d_fused_kernel(*refs, n, k, d, n_layer, skipc):
    if skipc:
        (eps_ref, x_ref, a_ref, w_ref, g_ref, b_ref,
         wo_ref, go_ref, bo_ref, out_ref, h_ref) = refs
    else:
        (eps_ref, x_ref, a_ref, w_ref, g_ref, b_ref, out_ref) = refs
        h_ref = out_ref                     # layer carry lives in the resident output block

    l = pl.program_id(0)
    count = n * k

    @pl.when(l == 0)
    def _init():
        h_ref[...] = x_ref[...]
        if skipc:
            out_ref[...] = jnp.zeros_like(out_ref)

    h = h_ref[...]                          # (n, k*d) resident activation carry
    A = a_ref[...]                          # (n, n) dense adjacency, A[i, j] = #edges j -> i
    W = w_ref[0]                            # (k*d, k*d) block-diagonal kron(I_k, W_l)
    eps = eps_ref[l]                        # per-layer GIN eps (SMEM scalar)

    # GIN aggregation for all k copies in ONE matmul, then the (batched) per-position linear.
    neigh = jnp.dot(A, h, preferred_element_type=jnp.float32)
    agg = (1.0 + eps) * h + neigh
    z = jnp.dot(agg, W, preferred_element_type=jnp.float32)

    # BatchNorm (training mode) + affine + ReLU, stats fused into the producer (single pass over z).
    scale, shift = _bn_scale_shift(z, g_ref[0], b_ref[0], k, d, count)
    act = jnp.maximum(z * scale + shift, 0.0)

    if skipc:
        # skip-connection concat + output_encoder folded into a running sum in the resident out block:
        #   y = cat_l(act_l) @ W_out  ==  sum_l act_l @ W_out_l
        out_ref[...] += jnp.dot(act, wo_ref[0], preferred_element_type=jnp.float32)
        h_ref[...] = act

        @pl.when(l == n_layer - 1)
        def _finalize():
            y = out_ref[...]
            sc, sh = _bn_scale_shift(y, go_ref[0], bo_ref[0], k, d, count)
            out_ref[...] = y * sc + sh
    else:
        # residual: x = relu(BN(conv(x))) + previous_x   (previous_x = 0 at layer 0)
        act = act + (l > 0).astype(jnp.float32) * h
        h_ref[...] = act                    # out_ref carries the final value to HBM automatically


def gnn3d_forward(x, edge_index, edge_attr, params, *, skipc=True, mask=None):
    """GNN3d.forward (mask=None).  x: (n, k, d_in) float, edge_index: (2, E) int32."""
    del edge_attr                           # unused in the reference forward
    assert mask is None                     # TODO(synk): masked path not implemented.

    n, k, d_in = x.shape
    conv_W = params["conv_W"]
    n_layer = len(conv_W)
    d_out = conv_W[0].shape[1]
    d = max(d_in, d_out)                    # uniform (zero-padded) channel width
    K = k * d

    # Dense adjacency: PyG GINConv aggregates x_j at target i for edges j=edge_index[0] -> i=edge_index[1].
    src, dst = edge_index[0], edge_index[1]
    A = jnp.zeros((n, n), jnp.float32).at[dst, src].add(1.0)

    # Zero-pad channels to d and fold k into the lane dimension: (n, k, d) -> (n, k*d).
    xp = jnp.zeros((n, k, d), jnp.float32).at[:, :, :d_in].set(x.astype(jnp.float32))
    xf = xp.reshape(n, K)

    eye_k = jnp.eye(k, dtype=jnp.float32)

    def pad_w(W):
        return jnp.zeros((d, d), jnp.float32).at[:W.shape[0], :W.shape[1]].set(
            W.astype(jnp.float32))

    def pad_tile_vec(v):
        vp = jnp.zeros((d,), jnp.float32).at[:v.shape[0]].set(v.astype(jnp.float32))
        return jnp.tile(vp, k)              # (K,): lane kk*d + c holds v[c]

    W_stack = jnp.stack([jnp.kron(eye_k, pad_w(W)) for W in conv_W])                   # (L, K, K)
    g_stack = jnp.stack([pad_tile_vec(g) for g in params["bn_gamma"]])[:, None, :]     # (L, 1, K)
    b_stack = jnp.stack([pad_tile_vec(b) for b in params["bn_beta"]])[:, None, :]      # (L, 1, K)
    eps_arr = jnp.asarray(params["conv_eps"], jnp.float32)                             # (L,)

    kernel = functools.partial(_gnn3d_fused_kernel, n=n, k=k, d=d,
                               n_layer=n_layer, skipc=skipc)

    in_specs = [
        pl.BlockSpec(memory_space=pltpu.MemorySpace.SMEM),           # eps      (L,)   scalar table
        pl.BlockSpec((n, K), lambda l: (0, 0)),                      # x        (resident, DMA'd once)
        pl.BlockSpec((n, n), lambda l: (0, 0)),                      # A        (resident, DMA'd once)
        pl.BlockSpec((1, K, K), lambda l: (l, 0, 0)),                # W_l      (streamed per layer)
        pl.BlockSpec((1, 1, K), lambda l: (l, 0, 0)),                # gamma_l
        pl.BlockSpec((1, 1, K), lambda l: (l, 0, 0)),                # beta_l
    ]
    args = [eps_arr, xf, A, W_stack, g_stack, b_stack]
    scratch = []

    if skipc:
        Wout = params["out_W"]                                       # (L*d_out, d_out)
        Wo_stack = jnp.stack([
            jnp.kron(eye_k, pad_w(Wout[l * d_out:(l + 1) * d_out, :]))
            for l in range(n_layer)])                                # (L, K, K)
        go = pad_tile_vec(params["out_gamma"])[None, None, :]        # (1, 1, K)
        bo = pad_tile_vec(params["out_beta"])[None, None, :]
        in_specs += [
            pl.BlockSpec((1, K, K), lambda l: (l, 0, 0)),            # W_out_l  (streamed per layer)
            pl.BlockSpec((1, 1, K), lambda l: (0, 0, 0)),            # out gamma (resident)
            pl.BlockSpec((1, 1, K), lambda l: (0, 0, 0)),            # out beta  (resident)
        ]
        args += [Wo_stack, go, bo]
        scratch += [pltpu.VMEM((n, K), jnp.float32)]                 # activation carry (out_ref holds y)

    out_flat = pl.pallas_call(
        kernel,
        out_shape=jax.ShapeDtypeStruct((n, K), jnp.float32),
        grid=(n_layer,),
        in_specs=in_specs,
        out_specs=pl.BlockSpec((n, K), lambda l: (0, 0)),            # lane-dense, resident output block
        scratch_shapes=scratch,
        compiler_params=pltpu.CompilerParams(
            dimension_semantics=("arbitrary",),                      # layer axis carries VMEM state
        ),
    )(*args)

    return out_flat.reshape(n, k, d)[:, :, :d_out]


def _ref_forward(x, A, params, skipc):
    """Pure-JAX reference mirroring the PyTorch code (explicit (k, n, d) internal layout)."""
    h = jnp.transpose(x, (1, 0, 2)).astype(jnp.float32)
    prev = 0.0
    skips = []
    for W, g, b, e in zip(params["conv_W"], params["bn_gamma"],
                          params["bn_beta"], params["conv_eps"]):
        agg = (1.0 + e) * h + jnp.einsum("ij,kjd->kid", A, h)
        z = agg @ W
        mean = z.mean(axis=(0, 1), keepdims=True)
        var = ((z - mean) ** 2).mean(axis=(0, 1), keepdims=True)
        z = (z - mean) / jnp.sqrt(var + BN_EPS) * g + b
        z = jnp.maximum(z, 0.0)
        if skipc:
            skips.append(z)
            h = z
        else:
            h = z + prev
            prev = h
    if skipc:
        y = jnp.concatenate(skips, axis=-1) @ params["out_W"]
        mean = y.mean(axis=(0, 1), keepdims=True)
        var = ((y - mean) ** 2).mean(axis=(0, 1), keepdims=True)
        h = (y - mean) / jnp.sqrt(var + BN_EPS) * params["out_gamma"] + params["out_beta"]
    return jnp.transpose(h, (1, 0, 2))


if __name__ == "__main__":
    n, k, d_in, d_out, n_layer, n_edges = 16, 4, 8, 32, 3, 48

    key = jax.random.PRNGKey(0)
    kx, ke, kp = jax.random.split(key, 3)
    x = jax.random.normal(kx, (n, k, d_in), jnp.float32)
    edge_index = jax.random.randint(ke, (2, n_edges), 0, n, jnp.int32)
    edge_attr = jnp.zeros((n_edges,), jnp.int32)     # unused

    # Deterministic parameters (glorot-uniform linears, non-trivial BN affines, per-layer GIN eps).
    pkeys = jax.random.split(kp, 3 * n_layer + 3)

    def glorot(kk, shape):
        lim = (6.0 / (shape[0] + shape[1])) ** 0.5
        return jax.random.uniform(kk, shape, jnp.float32, -lim, lim)

    params = {
        "conv_W": [glorot(pkeys[i], (d_in if i == 0 else d_out, d_out)) for i in range(n_layer)],
        "bn_gamma": [jax.random.uniform(pkeys[n_layer + i], (d_out,), jnp.float32, 0.5, 1.5)
                     for i in range(n_layer)],
        "bn_beta": [jax.random.uniform(pkeys[2 * n_layer + i], (d_out,), jnp.float32, -0.5, 0.5)
                    for i in range(n_layer)],
        "conv_eps": [0.1 * i for i in range(n_layer)],
        "out_W": glorot(pkeys[3 * n_layer], (n_layer * d_out, d_out)),
        "out_gamma": jax.random.uniform(pkeys[3 * n_layer + 1], (d_out,), jnp.float32, 0.5, 1.5),
        "out_beta": jax.random.uniform(pkeys[3 * n_layer + 2], (d_out,), jnp.float32, -0.5, 0.5),
    }

    A = jnp.zeros((n, n), jnp.float32).at[edge_index[1], edge_index[0]].add(1.0)

    # skipc=True (module default): GIN layers + BN + ReLU, skip concat, output encoder, output BN.
    out = jax.block_until_ready(gnn3d_forward(x, edge_index, edge_attr, params, skipc=True))
    assert out.shape == (n, k, d_out) and out.dtype == jnp.float32
    ref = _ref_forward(x, A, params, skipc=True)
    assert jnp.allclose(out, ref, atol=2e-3, rtol=2e-3), "skipc=True mismatch vs reference"

    # skipc=False: residual accumulation path.
    out_r = jax.block_until_ready(gnn3d_forward(x, edge_index, edge_attr, params, skipc=False))
    ref_r = _ref_forward(x, A, params, skipc=False)
    assert jnp.allclose(out_r, ref_r, atol=2e-3, rtol=2e-3), "skipc=False mismatch vs reference"

    print("KERNEL_OK")
</pallas_src>

<mosaic_0001>
module attributes {stable_mosaic.version = 11 : i64} {
  func.func @_gnn3d_fused_kernel(%arg0: i32, %arg1: memref<3xf32, #tpu.memory_space<smem>>, %arg2: memref<16x128xf32, #tpu.memory_space<vmem>>, %arg3: memref<16x16xf32, #tpu.memory_space<vmem>>, %arg4: memref<1x128x128xf32, #tpu.memory_space<vmem>>, %arg5: memref<1x1x128xf32, #tpu.memory_space<vmem>>, %arg6: memref<1x1x128xf32, #tpu.memory_space<vmem>>, %arg7: memref<1x128x128xf32, #tpu.memory_space<vmem>>, %arg8: memref<1x1x128xf32, #tpu.memory_space<vmem>>, %arg9: memref<1x1x128xf32, #tpu.memory_space<vmem>>, %arg10: memref<16x128xf32, #tpu.memory_space<vmem>>, %arg11: memref<16x128xf32, #tpu.memory_space<vmem>>) attributes {dimension_semantics = [#tpu.dimension_semantics<arbitrary>], iteration_bounds = array<i64: 3>, scalar_prefetch = 0 : i64, scratch_operands = 1 : i64, tpu.core_type = #tpu.core_type<tc>, window_params = [{transform_indices = @transform_0, window_bounds = array<i64: 3>}, {pipeline_mode = #tpu.pipeline_mode<synchronous>, transform_indices = @transform_1, window_bounds = array<i64: 16, 128>}, {pipeline_mode = #tpu.pipeline_mode<synchronous>, transform_indices = @transform_2, window_bounds = array<i64: 16, 16>}, {transform_indices = @transform_3, window_bounds = array<i64: 1, 128, 128>}, {transform_indices = @transform_4, window_bounds = array<i64: 1, 1, 128>}, {transform_indices = @transform_5, window_bounds = array<i64: 1, 1, 128>}, {transform_indices = @transform_6, window_bounds = array<i64: 1, 128, 128>}, {pipeline_mode = #tpu.pipeline_mode<synchronous>, transform_indices = @transform_7, window_bounds = array<i64: 1, 1, 128>}, {pipeline_mode = #tpu.pipeline_mode<synchronous>, transform_indices = @transform_8, window_bounds = array<i64: 1, 1, 128>}, {pipeline_mode = #tpu.pipeline_mode<synchronous>, transform_indices = @transform_9, window_bounds = array<i64: 16, 128>}]} {
    %c0_i32 = arith.constant 0 : i32
    %0 = arith.cmpi eq, %arg0, %c0_i32 : i32
    %1 = arith.extui %0 : i1 to i32
    %c0_i32_0 = arith.constant 0 : i32
    %2 = arith.cmpi ne, %1, %c0_i32_0 : i32
    scf.if %2 {
      %c0_35 = arith.constant 0 : index
      %c0_36 = arith.constant 0 : index
      %64 = vector.load %arg2[%c0_35, %c0_36] : memref<16x128xf32, #tpu.memory_space<vmem>>, vector<16x128xf32>
      %c0_37 = arith.constant 0 : index
      %c0_38 = arith.constant 0 : index
      %65 = vector.load %arg11[%c0_37, %c0_38] : memref<16x128xf32, #tpu.memory_space<vmem>>, vector<16x128xf32>
      tpu.vector_store %arg11[%c0_37, %c0_38], %64 {strides = array<i32>} : memref<16x128xf32, #tpu.memory_space<vmem>>, vector<16x128xf32>,
      %cst_39 = arith.constant 0.000000e+00 : f32
      %66 = vector.broadcast %cst_39 : f32 to vector<16x128xf32>
      %c0_40 = arith.constant 0 : index
      %c0_41 = arith.constant 0 : index
      %67 = vector.load %arg10[%c0_40, %c0_41] : memref<16x128xf32, #tpu.memory_space<vmem>>, vector<16x128xf32>
      tpu.vector_store %arg10[%c0_40, %c0_41], %66 {strides = array<i32>} : memref<16x128xf32, #tpu.memory_space<vmem>>, vector<16x128xf32>,
    } else {
    }
    %c0 = arith.constant 0 : index
    %c0_1 = arith.constant 0 : index
    %3 = vector.load %arg11[%c0, %c0_1] : memref<16x128xf32, #tpu.memory_space<vmem>>, vector<16x128xf32>
    %c0_2 = arith.constant 0 : index
    %c0_3 = arith.constant 0 : index
    %4 = vector.load %arg3[%c0_2, %c0_3] : memref<16x16xf32, #tpu.memory_space<vmem>>, vector<16x16xf32>
    %c0_4 = arith.constant 0 : index
    %c0_5 = arith.constant 0 : index
    %c0_6 = arith.constant 0 : index
    %5 = vector.load %arg4[%c0_4, %c0_5, %c0_6] : memref<1x128x128xf32, #tpu.memory_space<vmem>>, vector<1x128x128xf32>
    %6 = vector.shape_cast %5 : vector<1x128x128xf32> to vector<128x128xf32>
    %7 = arith.index_cast %arg0 : i32 to index
    %8 = memref.load %arg1[%7] : memref<3xf32, #tpu.memory_space<smem>>
    %cst = arith.constant dense<0.000000e+00> : vector<16x128xf32>
    %9 = tpu.matmul %4, %3, %cst {dimension_numbers = #tpu.dot_dimension_numbers<[1], [0], [0], [1], [0, 0, 1, 1], [], []>} : vector<16x16xf32>, vector<16x128xf32>, vector<16x128xf32> -> vector<16x128xf32>
    %cst_7 = arith.constant 1.000000e+00 : f32
    %10 = arith.addf %cst_7, %8 : f32
    %11 = vector.broadcast %10 : f32 to vector<16x128xf32>
    %12 = arith.mulf %11, %3 : vector<16x128xf32>
    %13 = arith.addf %12, %9 : vector<16x128xf32>
    %cst_8 = arith.constant dense<0.000000e+00> : vector<16x128xf32>
    %14 = tpu.matmul %13, %6, %cst_8 {dimension_numbers = #tpu.dot_dimension_numbers<[1], [0], [0], [1], [0, 0, 1, 1], [], []>} : vector<16x128xf32>, vector<128x128xf32>, vector<16x128xf32> -> vector<16x128xf32>
    %c0_9 = arith.constant 0 : index
    %c0_10 = arith.constant 0 : index
    %c0_11 = arith.constant 0 : index
    %15 = vector.load %arg5[%c0_9, %c0_10, %c0_11] : memref<1x1x128xf32, #tpu.memory_space<vmem>>, vector<1x1x128xf32>
    %16 = vector.shape_cast %15 : vector<1x1x128xf32> to vector<1x128xf32>
    %c0_12 = arith.constant 0 : index
    %c0_13 = arith.constant 0 : index
    %c0_14 = arith.constant 0 : index
    %17 = vector.load %arg6[%c0_12, %c0_13, %c0_14] : memref<1x1x128xf32, #tpu.memory_space<vmem>>, vector<1x1x128xf32>
    %18 = vector.shape_cast %17 : vector<1x1x128xf32> to vector<1x128xf32>
    %cst_15 = arith.constant dense<0.000000e+00> : vector<128xf32>
    %19 = vector.multi_reduction <add>, %14, %cst_15 [0] : vector<16x128xf32> to vector<128xf32>
    %20 = vector.shape_cast %19 : vector<128xf32> to vector<1x128xf32>
    %21 = arith.mulf %14, %14 : vector<16x128xf32>
    %cst_16 = arith.constant dense<0.000000e+00> : vector<128xf32>
    %22 = vector.multi_reduction <add>, %21, %cst_16 [0] : vector<16x128xf32> to vector<128xf32>
    %23 = vector.shape_cast %22 : vector<128xf32> to vector<1x128xf32>
    %c32_i32 = arith.constant 32 : i32
    %24 = tpu.dynamic_rotate %20 by %c32_i32 dim 1 : vector<1x128xf32>, i32 -> vector<1x128xf32>
    %25 = arith.addf %20, %24 : vector<1x128xf32>
    %c64_i32 = arith.constant 64 : i32
    %26 = tpu.dynamic_rotate %20 by %c64_i32 dim 1 : vector<1x128xf32>, i32 -> vector<1x128xf32>
    %27 = arith.addf %25, %26 : vector<1x128xf32>
    %c96_i32 = arith.constant 96 : i32
    %28 = tpu.dynamic_rotate %20 by %c96_i32 dim 1 : vector<1x128xf32>, i32 -> vector<1x128xf32>
    %29 = arith.addf %27, %28 : vector<1x128xf32>
    %c32_i32_17 = arith.constant 32 : i32
    %30 = tpu.dynamic_rotate %23 by %c32_i32_17 dim 1 : vector<1x128xf32>, i32 -> vector<1x128xf32>
    %31 = arith.addf %23, %30 : vector<1x128xf32>
    %c64_i32_18 = arith.constant 64 : i32
    %32 = tpu.dynamic_rotate %23 by %c64_i32_18 dim 1 : vector<1x128xf32>, i32 -> vector<1x128xf32>
    %33 = arith.addf %31, %32 : vector<1x128xf32>
    %c96_i32_19 = arith.constant 96 : i32
    %34 = tpu.dynamic_rotate %23 by %c96_i32_19 dim 1 : vector<1x128xf32>, i32 -> vector<1x128xf32>
    %35 = arith.addf %33, %34 : vector<1x128xf32>
    %cst_20 = arith.constant 1.562500e-02 : f32
    %36 = vector.broadcast %cst_20 : f32 to vector<1x128xf32>
    %37 = arith.mulf %29, %36 : vector<1x128xf32>
    %cst_21 = arith.constant 1.562500e-02 : f32
    %38 = vector.broadcast %cst_21 : f32 to vector<1x128xf32>
    %39 = arith.mulf %35, %38 : vector<1x128xf32>
    %40 = arith.mulf %37, %37 : vector<1x128xf32>
    %41 = arith.subf %39, %40 : vector<1x128xf32>
    %cst_22 = arith.constant 9.99999974E-6 : f32
    %42 = vector.broadcast %cst_22 : f32 to vector<1x128xf32>
    %43 = arith.addf %41, %42 : vector<1x128xf32>
    %44 = math.rsqrt %43 : vector<1x128xf32>
    %45 = arith.mulf %16, %44 : vector<1x128xf32>
    %46 = arith.mulf %37, %45 : vector<1x128xf32>
    %47 = arith.subf %18, %46 : vector<1x128xf32>
    %48 = vector.broadcast %45 : vector<1x128xf32> to vector<16x128xf32>
    %49 = arith.mulf %14, %48 : vector<16x128xf32>
    %50 = vector.broadcast %47 : vector<1x128xf32> to vector<16x128xf32>
    %51 = arith.addf %49, %50 : vector<16x128xf32>
    %cst_23 = arith.constant 0.000000e+00 : f32
    %52 = vector.broadcast %cst_23 : f32 to vector<16x128xf32>
    %53 = arith.maximumf %51, %52 : vector<16x128xf32>
    %c0_24 = arith.constant 0 : index
    %c0_25 = arith.constant 0 : index
    %54 = vector.load %arg10[%c0_24, %c0_25] : memref<16x128xf32, #tpu.memory_space<vmem>>, vector<16x128xf32>
    %c0_26 = arith.constant 0 : index
    %c0_27 = arith.constant 0 : index
    %c0_28 = arith.constant 0 : index
    %55 = vector.load %arg7[%c0_26, %c0_27, %c0_28] : memref<1x128x128xf32, #tpu.memory_space<vmem>>, vector<1x128x128xf32>
    %56 = vector.shape_cast %55 : vector<1x128x128xf32> to vector<128x128xf32>
    %cst_29 = arith.constant dense<0.000000e+00> : vector<16x128xf32>
    %57 = tpu.matmul %53, %56, %cst_29 {dimension_numbers = #tpu.dot_dimension_numbers<[1], [0], [0], [1], [0, 0, 1, 1], [], []>} : vector<16x128xf32>, vector<128x128xf32>, vector<16x128xf32> -> vector<16x128xf32>
    %58 = arith.addf %54, %57 : vector<16x128xf32>
    %c0_30 = arith.constant 0 : index
    %c0_31 = arith.constant 0 : index
    %59 = vector.load %arg10[%c0_30, %c0_31] : memref<16x128xf32, #tpu.memory_space<vmem>>, vector<16x128xf32>
    tpu.vector_store %arg10[%c0_30, %c0_31], %58 {strides = array<i32>} : memref<16x128xf32, #tpu.memory_space<vmem>>, vector<16x128xf32>,
    %c0_32 = arith.constant 0 : index
    %c0_33 = arith.constant 0 : index
    %60 = vector.load %arg11[%c0_32, %c0_33] : memref<16x128xf32, #tpu.memory_space<vmem>>, vector<16x128xf32>
    tpu.vector_store %arg11[%c0_32, %c0_33], %53 {strides = array<i32>} : memref<16x128xf32, #tpu.memory_space<vmem>>, vector<16x128xf32>,
    %c2_i32 = arith.constant 2 : i32
    %61 = arith.cmpi eq, %arg0, %c2_i32 : i32
    %62 = arith.extui %61 : i1 to i32
    %c0_i32_34 = arith.constant 0 : i32
    %63 = arith.cmpi ne, %62, %c0_i32_34 : i32
    scf.if %63 {
      %c0_35 = arith.constant 0 : index
      %c0_36 = arith.constant 0 : index
      %64 = vector.load %arg10[%c0_35, %c0_36] : memref<16x128xf32, #tpu.memory_space<vmem>>, vector<16x128xf32>
      %c0_37 = arith.constant 0 : index
      %c0_38 = arith.constant 0 : index
      %c0_39 = arith.constant 0 : index
      %65 = vector.load %arg8[%c0_37, %c0_38, %c0_39] : memref<1x1x128xf32, #tpu.memory_space<vmem>>, vector<1x1x128xf32>
      %66 = vector.shape_cast %65 : vector<1x1x128xf32> to vector<1x128xf32>
      %c0_40 = arith.constant 0 : index
      %c0_41 = arith.constant 0 : index
      %c0_42 = arith.constant 0 : index
      %67 = vector.load %arg9[%c0_40, %c0_41, %c0_42] : memref<1x1x128xf32, #tpu.memory_space<vmem>>, vector<1x1x128xf32>
      %68 = vector.shape_cast %67 : vector<1x1x128xf32> to vector<1x128xf32>
      %cst_43 = arith.constant dense<0.000000e+00> : vector<128xf32>
      %69 = vector.multi_reduction <add>, %64, %cst_43 [0] : vector<16x128xf32> to vector<128xf32>
      %70 = vector.shape_cast %69 : vector<128xf32> to vector<1x128xf32>
      %71 = arith.mulf %64, %64 : vector<16x128xf32>
      %cst_44 = arith.constant dense<0.000000e+00> : vector<128xf32>
      %72 = vector.multi_reduction <add>, %71, %cst_44 [0] : vector<16x128xf32> to vector<128xf32>
      %73 = vector.shape_cast %72 : vector<128xf32> to vector<1x128xf32>
      %c32_i32_45 = arith.constant 32 : i32
      %74 = tpu.dynamic_rotate %70 by %c32_i32_45 dim 1 : vector<1x128xf32>, i32 -> vector<1x128xf32>
      %75 = arith.addf %70, %74 : vector<1x128xf32>
      %c64_i32_46 = arith.constant 64 : i32
      %76 = tpu.dynamic_rotate %70 by %c64_i32_46 dim 1 : vector<1x128xf32>, i32 -> vector<1x128xf32>
      %77 = arith.addf %75, %76 : vector<1x128xf32>
      %c96_i32_47 = arith.constant 96 : i32
      %78 = tpu.dynamic_rotate %70 by %c96_i32_47 dim 1 : vector<1x128xf32>, i32 -> vector<1x128xf32>
      %79 = arith.addf %77, %78 : vector<1x128xf32>
      %c32_i32_48 = arith.constant 32 : i32
      %80 = tpu.dynamic_rotate %73 by %c32_i32_48 dim 1 : vector<1x128xf32>, i32 -> vector<1x128xf32>
      %81 = arith.addf %73, %80 : vector<1x128xf32>
      %c64_i32_49 = arith.constant 64 : i32
      %82 = tpu.dynamic_rotate %73 by %c64_i32_49 dim 1 : vector<1x128xf32>, i32 -> vector<1x128xf32>
      %83 = arith.addf %81, %82 : vector<1x128xf32>
      %c96_i32_50 = arith.constant 96 : i32
      %84 = tpu.dynamic_rotate %73 by %c96_i32_50 dim 1 : vector<1x128xf32>, i32 -> vector<1x128xf32>
      %85 = arith.addf %83, %84 : vector<1x128xf32>
      %cst_51 = arith.constant 1.562500e-02 : f32
      %86 = vector.broadcast %cst_51 : f32 to vector<1x128xf32>
      %87 = arith.mulf %79, %86 : vector<1x128xf32>
      %cst_52 = arith.constant 1.562500e-02 : f32
      %88 = vector.broadcast %cst_52 : f32 to vector<1x128xf32>
      %89 = arith.mulf %85, %88 : vector<1x128xf32>
      %90 = arith.mulf %87, %87 : vector<1x128xf32>
      %91 = arith.subf %89, %90 : vector<1x128xf32>
      %cst_53 = arith.constant 9.99999974E-6 : f32
      %92 = vector.broadcast %cst_53 : f32 to vector<1x128xf32>
      %93 = arith.addf %91, %92 : vector<1x128xf32>
      %94 = math.rsqrt %93 : vector<1x128xf32>
      %95 = arith.mulf %66, %94 : vector<1x128xf32>
      %96 = arith.mulf %87, %95 : vector<1x128xf32>
      %97 = arith.subf %68, %96 : vector<1x128xf32>
      %98 = vector.broadcast %95 : vector<1x128xf32> to vector<16x128xf32>
      %99 = arith.mulf %64, %98 : vector<16x128xf32>
      %100 = vector.broadcast %97 : vector<1x128xf32> to vector<16x128xf32>
      %101 = arith.addf %99, %100 : vector<16x128xf32>
      %c0_54 = arith.constant 0 : index
      %c0_55 = arith.constant 0 : index
      %102 = vector.load %arg10[%c0_54, %c0_55] : memref<16x128xf32, #tpu.memory_space<vmem>>, vector<16x128xf32>
      tpu.vector_store %arg10[%c0_54, %c0_55], %101 {strides = array<i32>} : memref<16x128xf32, #tpu.memory_space<vmem>>, vector<16x128xf32>,
    } else {
    }
    return
  }
  func.func @transform_0(%arg0: i32) -> i32 {
    %c0_i32 = arith.constant 0 : i32
    %c0_i32_0 = arith.constant 0 : i32
    return %c0_i32 : i32
  }
  func.func @transform_1(%arg0: i32) -> (i32, i32) {
    %c0_i32 = arith.constant 0 : i32
    %c0_i32_0 = arith.constant 0 : i32
    %c0_i32_1 = arith.constant 0 : i32
    return %c0_i32, %c0_i32_0 : i32, i32
  }
  func.func @transform_2(%arg0: i32) -> (i32, i32) {
    %c0_i32 = arith.constant 0 : i32
    %c0_i32_0 = arith.constant 0 : i32
    %c0_i32_1 = arith.constant 0 : i32
    return %c0_i32, %c0_i32_0 : i32, i32
  }
  func.func @transform_3(%arg0: i32) -> (i32, i32, i32) {
    %c0_i32 = arith.constant 0 : i32
    %c0_i32_0 = arith.constant 0 : i32
    %c0_i32_1 = arith.constant 0 : i32
    return %arg0, %c0_i32, %c0_i32_0 : i32, i32, i32
  }
  func.func @transform_4(%arg0: i32) -> (i32, i32, i32) {
    %c0_i32 = arith.constant 0 : i32
    %c0_i32_0 = arith.constant 0 : i32
    %c0_i32_1 = arith.constant 0 : i32
    return %arg0, %c0_i32, %c0_i32_0 : i32, i32, i32
  }
  func.func @transform_5(%arg0: i32) -> (i32, i32, i32) {
    %c0_i32 = arith.constant 0 : i32
    %c0_i32_0 = arith.constant 0 : i32
    %c0_i32_1 = arith.constant 0 : i32
    return %arg0, %c0_i32, %c0_i32_0 : i32, i32, i32
  }
  func.func @transform_6(%arg0: i32) -> (i32, i32, i32) {
    %c0_i32 = arith.constant 0 : i32
    %c0_i32_0 = arith.constant 0 : i32
    %c0_i32_1 = arith.constant 0 : i32
    return %arg0, %c0_i32, %c0_i32_0 : i32, i32, i32
  }
  func.func @transform_7(%arg0: i32) -> (i32, i32, i32) {
    %c0_i32 = arith.constant 0 : i32
    %c0_i32_0 = arith.constant 0 : i32
    %c0_i32_1 = arith.constant 0 : i32
    %c0_i32_2 = arith.constant 0 : i32
    return %c0_i32, %c0_i32_0, %c0_i32_1 : i32, i32, i32
  }
  func.func @transform_8(%arg0: i32) -> (i32, i32, i32) {
    %c0_i32 = arith.constant 0 : i32
    %c0_i32_0 = arith.constant 0 : i32
    %c0_i32_1 = arith.constant 0 : i32
    %c0_i32_2 = arith.constant 0 : i32
    return %c0_i32, %c0_i32_0, %c0_i32_1 : i32, i32, i32
  }
  func.func @transform_9(%arg0: i32) -> (i32, i32) {
    %c0_i32 = arith.constant 0 : i32
    %c0_i32_0 = arith.constant 0 : i32
    %c0_i32_1 = arith.constant 0 : i32
    return %c0_i32, %c0_i32_0 : i32, i32
  }
}

</mosaic_0001>

<bundles_post_ra>
// kernel: tpu_custom_call.1
= control target key start
LH: loop header
LB: loop body
LE: loop exit
PB: predicated region body
PF: predicated region fallthrough
CT: control target
= control target key end

     0   :  { %s1807_s0 = inlined_call_operand.hbm [shape: f32[3], index: 0, kind: input, shape index: {}]   ;;  %s1808_s1 = inlined_call_operand.hbm [shape: f32[16,128], index: 1, kind: input, shape index: {}]   ;;  %s1809_s2 = inlined_call_operand.hbm [shape: f32[16,16], index: 2, kind: input, shape index: {}]   ;;  %s1810_s3 = inlined_call_operand.hbm [shape: f32[3,128,128], index: 3, kind: input, shape index: {}]   ;;  %s1811_s4 = inlined_call_operand.vmem [shape: f32[3,1,128], index: 4, kind: input, shape index: {}]   ;;  %s1812_s5 = inlined_call_operand.vmem [shape: f32[3,1,128], index: 5, kind: input, shape index: {}]   ;;  %s1813_s6 = inlined_call_operand.hbm [shape: f32[3,128,128], index: 6, kind: input, shape index: {}]   ;;  %s1814_s7 = inlined_call_operand.vmem [shape: f32[1,1,128], index: 7, kind: input, shape index: {}]   ;;  %s1815_s8 = inlined_call_operand.vmem [shape: f32[1,1,128], index: 8, kind: input, shape index: {}]   ;;  %s1816_s9 = inlined_call_operand.hbm [shape: f32[16,128], index: 9, kind: output, shape index: {}]  }
   0x1   :  { %1824 = sst [smem:[#allocation21_spill]] %s1808_s1 }
   0x2   :  { %1825 = sst [smem:[#allocation22_spill]] %s1816_s9 }
   0x3   :  { %14 = vsyncpa [#allocation6], 0 }
   0x4   :  { %15 = vsyncpa [#allocation4], 0 }
   0x5   :  { %16 = vsyncpa [#allocation9], 0 }
   0x6   :  { %17 = vsyncpa [#allocation5], 0  ;;  %s1500_s30 = smov 0   ;;  %s1502_s10 = smov 0  }
   0x7   :  { %s1504_s11 = smov 0   ;;  %s1506_s12 = smov 0  }
   0x8 LB: > { %1826 = sst [smem:[#allocation18_spill]] %s1427_s11  ;;  %s1519_s13 = sadd.s32 4294967295, %s1431_s12   ;;  %s1431_s12 = sphi %s1506_s12, %s1846_s12   ;;  %s1427_s11 = sphi %s1504_s11, %s1848_s11   ;;  %s1423_s10 = sphi %s1502_s10, %s1850_s10   ;;  %s1419_s30 = sphi %s1500_s30, %s1849_s30  }
   0x9   : > { %s1522_s14 = sadd.s32 1, %s1431_s12   ;;  %s93_s16 = sadd.s32 1, %s1427_s11 }
   0xa   : > { %1827 = sst [smem:[#allocation19_spill]] %s1522_s14  ;;  %s90_s15 = ssub.s32 %s1431_s12, %s1522_s14 }
   0xb   : > { %p91_p0 = scmp.eq.s32.totalorder %s90_s15, 0  ;;  %p100_p1 = scmp.ne.s32.totalorder %s1427_s11, %s1423_s10 }
   0xc   : > { %p101_p2 = scmp.eq.s32.totalorder %s1431_s12, 0  ;;  %p106_p3 = scmp.ne.s32.totalorder %s1423_s10, %s1419_s30 }
   0xd   : > { %s1532_s17 = scalar_select %p91_p0, %s1427_s11, %s93_s16  }
   0xe   : > { %p1534_p4 = por %p101_p2, %p100_p1  ;;  %p1817_p5 = scmp.eq.s32.totalorder %s1519_s13, 0 }
   0xf   : > { %1828 = sst [smem:[#allocation20_spill]] %s1532_s17  ;;  %p997_p6 = scmp.ge.s32.totalorder %s1431_s12, 1 }
  0x10   : > { %p258_p7 = scmp.lt.s32.totalorder %s1431_s12, 4  ;;  %p1543_p8 = por %p1817_p5, %p106_p3 }
  0x11   : > { %s1433_s21 = smov [#allocation7]   ;;  %p1181_p13 = scmp.lt.s32.totalorder %s1431_s12, 3 }
  0x12   : > { %s1830_s19 = scalar_select %p1543_p8, 1, 0 }
  0x13   : > { %p1548_p10 = pnand %p997_p6, %p258_p7  ;;  %s279_s22 = sshll.u32 %s1433_s21, 4  ;;  %s280_s22 = int_to_ptr.vmem [resolvable:$true] %s279_s22 }
  0x14   : > { %s312_s24 = sand.u32 1, %s1431_s12   ;;  %s314_s25 = sand.u32 1, %s1427_s11  }
  0x15   : > { %s1831_s20 = scalar_select %p1548_p10, 1, 0 }
  0x16   : > { %p1161_p11 = pneg %p1548_p10  ;;  %p1565_p0 = pnand %p1181_p13, %p1534_p4 }
  0x17   : > { %s1249_s27 = scalar_lea.vmem %s280_s22, 256  ;;  %p1257_p7 = scmp.lt.s32.totalorder %s280_s22, %s280_s22 }
  0x18   : > { %p1556_p12 = pnand %p1161_p11, %p1817_p5  ;;  %p1250_p2 = scmp.ne.s32.totalorder %s280_s22, %s1249_s27 }
  0x19   : > { %p1258_p11 = scmp.lt.s32.totalorder %s1249_s27, %s1249_s27 }
  0x1a   : > { %p1821_p1 = pneg %p1556_p12 }
  0x1b   : > { %p1259_p9 = por %p1258_p11, %p1257_p7 }
  0x1c   : > { %p1252_p3 = pnand %p1250_p2, %p1821_p1 }
  0x1e   : > { %p1253_p6 = pneg %p1252_p3 }
  0x20   : > { %p1260_p5 = pnand %p1259_p9, %p1253_p6 }
  0x22   : > { %1263 = shalt.err (!%p1260_p5)
}
  0x23   : > { %s1434_s28 = smov 128   ;;  %s1435_s29 = smov 8  }
  0x24   : > { %s1834_s1 = sld [smem:[#allocation21_spill]]  ;;  %s1582_s16 = sshll.u32 %s314_s25, 7 }
  0x25   : > { %s1022_s18 = sshll.u32 %s1431_s12, 11  ;;  %s316_s11 = scalar_lea.vmem [#allocation10], %s1582_s16 }
  0x26   : > { %s1590_s17 = scalar_lea.hbm %s1810_s3, %s1022_s18  ;;  %s323_s14 = sshll.u32 %s316_s11, 4  ;;  %s1593_s14 = int_to_ptr.vmem [resolvable:$true] %s323_s14 }
  0x27   : > { %s1595_s9 = scalar_lea.sflag [#allocation4], %s312_s24  ;;  %p1266_p5 = pneg %p1565_p0 }
  0x28   : > { %s1269_s15 = scalar_lea.hbm %s1810_s3, 6144  ;;  %p1270_p2 = scmp.lt.s32.totalorder %s1590_s17, %s1810_s3 }
  0x2a   : > { %1167 = dma.hbm_to_vmem [thread:$0]  (!%p1556_p12), %s1834_s1, 256, %s280_s22, [#allocation4], %s1434_s28, %s1434_s28, %s1435_s29  }
  0x2b   : > { %s1264_s22 = scalar_lea.hbm %s1590_s17, 2048 }
  0x2c   : > { %p1265_p4 = scmp.ne.s32.totalorder %s1590_s17, %s1264_s22  ;;  %p1271_p3 = scmp.lt.s32.totalorder %s1269_s15, %s1264_s22 }
  0x2e   : > { %p1267_p9 = pnand %p1266_p5, %p1265_p4  ;;  %p1272_p6 = por %p1271_p3, %p1270_p2 }
  0x30   : > { %p1268_p13 = pneg %p1267_p9 }
  0x32   : > { %p1273_p7 = pnand %p1272_p6, %p1268_p13 }
  0x34   : > { %1276 = shalt.err (!%p1273_p7)
}
  0x35   : > { %s1277_s11 = scalar_lea.vmem %s1593_s14, 2048  ;;  %s1436_s24 = smov [#allocation10]  }
  0x36   : > { %p1278_p11 = scmp.ne.s32.totalorder %s1593_s14, %s1277_s11  ;;  %s1282_s25 = sshll.u32 %s1436_s24, 4  ;;  %s1283_s25 = int_to_ptr.vmem [resolvable:$false] %s1282_s25 }
  0x37   : > { %s1284_s30 = scalar_lea.vmem %s1283_s25, 4096  ;;  %p1285_p1 = scmp.lt.s32.totalorder %s1593_s14, %s1283_s25 }
  0x38   : > { %p1280_p4 = pnand %p1278_p11, %p1266_p5  ;;  %p1286_p8 = scmp.lt.s32.totalorder %s1284_s30, %s1277_s11 }
  0x3a   : > { %p1281_p9 = pneg %p1280_p4  ;;  %p1287_p10 = por %p1286_p8, %p1285_p1 }
  0x3c   : > { %p1288_p2 = pnand %p1287_p10, %p1281_p9 }
  0x3e   : > { %1291 = shalt.err (!%p1288_p2)
}
  0x3f   : > { %1174 = dma.hbm_to_vmem [thread:$0]  (!%p1565_p0), %s1590_s17, 2048, %s1593_s14, %s1595_s9, %s1434_s28, %s1434_s28, %s1435_s29  }
  0x40   : > { %s1437_s22 = smov [#allocation3]   ;;  %s1438_s27 = smov [#allocation8]  }
  0x41   : > { %1164 = dma.hbm_to_smem (!%p1556_p12), %s1807_s0, 16, %s1437_s22, [#allocation6]  }
  0x42   : > { %s292_s11 = sshll.u32 %s1438_s27, 4  ;;  %s1635_s30 = scalar_lea.hbm %s1813_s6, %s1022_s18  ;;  %s293_s11 = int_to_ptr.vmem [resolvable:$true] %s292_s11 }
  0x43   : > { %s1314_s1 = scalar_lea.vmem %s293_s11, 256  ;;  %p1835_p10 = pneg %p1556_p12 }
  0x44   : > { %p1315_p8 = scmp.ne.s32.totalorder %s293_s11, %s1314_s1  ;;  %p1322_p3 = scmp.lt.s32.totalorder %s293_s11, %s293_s11 }
  0x45   : > { %p1323_p6 = scmp.lt.s32.totalorder %s1314_s1, %s1314_s1 }
  0x46   : > { %p1317_p1 = pnand %p1315_p8, %p1835_p10 }
  0x47   : > { %p1324_p7 = por %p1323_p6, %p1322_p3 }
  0x48   : > { %p1318_p13 = pneg %p1317_p1 }
  0x4a   : > { %p1325_p11 = pnand %p1324_p7, %p1318_p13 }
  0x4c   : > { %1328 = shalt.err (!%p1325_p11)
}
  0x4d   : > { %1170 = dma.hbm_to_vmem [thread:$0]  (!%p1556_p12), %s1809_s2, 256, %s293_s11, [#allocation9], %s1434_s28, %s1434_s28, %s1435_s29  }
  0x4e   : > { %s349_s17 = scalar_lea.vmem [#allocation11], %s1582_s16  ;;  %s1329_s1 = scalar_lea.hbm %s1635_s30, 2048 }
  0x4f   : > { %s356_s18 = sshll.u32 %s349_s17, 4  ;;  %p1330_p4 = scmp.ne.s32.totalorder %s1635_s30, %s1329_s1  ;;  %s357_s18 = int_to_ptr.vmem [resolvable:$true] %s356_s18 }
  0x50   : > { %s1334_s15 = scalar_lea.hbm %s1813_s6, 6144  ;;  %p1335_p8 = scmp.lt.s32.totalorder %s1635_s30, %s1813_s6 }
  0x51   : > { %p1332_p9 = pnand %p1330_p4, %p1266_p5  ;;  %p1336_p10 = scmp.lt.s32.totalorder %s1334_s15, %s1329_s1 }
  0x53   : > { %p1333_p2 = pneg %p1332_p9  ;;  %p1337_p1 = por %p1336_p10, %p1335_p8 }
  0x55   : > { %p1338_p12 = pnand %p1337_p1, %p1333_p2 }
  0x57   : > { %1341 = shalt.err (!%p1338_p12)
}
  0x58   : > { %s1342_s16 = scalar_lea.vmem %s357_s18, 2048  ;;  %s1439_s11 = smov [#allocation11]  }
  0x59   : > { %p1343_p13 = scmp.ne.s32.totalorder %s357_s18, %s1342_s16  ;;  %s1347_s24 = sshll.u32 %s1439_s11, 4  ;;  %s1348_s24 = int_to_ptr.vmem [resolvable:$false] %s1347_s24 }
  0x5a   : > { %s1349_s25 = scalar_lea.vmem %s1348_s24, 4096  ;;  %p1350_p7 = scmp.lt.s32.totalorder %s357_s18, %s1348_s24 }
  0x5b   : > { %p1345_p3 = pnand %p1343_p13, %p1266_p5  ;;  %p1351_p11 = scmp.lt.s32.totalorder %s1349_s25, %s1342_s16 }
  0x5d   : > { %p1346_p6 = pneg %p1345_p3  ;;  %p1352_p4 = por %p1351_p11, %p1350_p7 }
  0x5f   : > { %p1353_p9 = pnand %p1352_p4, %p1346_p6 }
  0x61   : > { %1356 = shalt.err (!%p1353_p9)
}
  0x62   : > { %1177 = dma.hbm_to_vmem [thread:$0]  (!%p1565_p0), %s1635_s30, 2048, %s357_s18, %s1595_s9, %s1434_s28, %s1434_s28, %s1435_s29  }
  0x63   : > { %p1836_p5 = scmp.ne.s32.totalorder %s1831_s20, 0 }
  0x64   : > { %p1837_p2 = scmp.eq.s32.totalorder (!%p1836_p5), %s1519_s13, 0 }
  0x65   : > { %368 = sbr.rel (%p1836_p5) target bundleno = 1108 (0x454), region = 56 }
  0x6a   : > { %1398 = dma.done.wait (%p1837_p2), [#allocation6], 16   ;;  %p1838_p8 = pmov %p1837_p2 }
  0x6b   : > { %p1839_p10 = pmov %p1837_p2 }
  0x6c   : > { %1400 = vsyncadd (%p1838_p8), [#allocation6], 4294967280 }
  0x6d   : > { %1402 = dma.done.wait (%p1839_p10), [#allocation4], 256   ;;  %p1840_p1 = pmov %p1837_p2 }
  0x6f   : > { %1404 = vsyncadd (%p1840_p1), [#allocation4], 4294967040  ;;  %p1841_p12 = pmov %p1840_p1 }
  0x70   : > { %p1842_p0 = pmov %p1840_p1 }
  0x71   : > { %1406 = dma.done.wait (%p1841_p12), [#allocation9], 256  }
  0x72   : > { %1408 = vsyncadd (%p1842_p0), [#allocation9], 4294967040  ;;  %s382_s9 = sand.u32 1, %s1519_s13   ;;  %s384_s20 = sand.u32 1, %s1423_s10  }
  0x73   : > { %s1012_s26 = sshll.u32 %s384_s20, 7  ;;  %s383_s28 = scalar_lea.sflag [#allocation4], %s382_s9 }
  0x74   : > { %s1687_s29 = scalar_lea.vmem [#allocation10], %s1012_s26  ;;  %p1843_p13 = scmp.ne.s32.totalorder %s1830_s19, 0 }
  0x76   : > { %1410 = dma.done.wait (%p1843_p13), %s383_s28, 4096  }
  0x77   : > { %1412 = vsyncadd (%p1843_p13), %s383_s28, 4294963200  ;;  %s1693_s30 = scalar_lea.vmem [#allocation11], %s1012_s26 }
  0x78   : > { %400 = sfence }
  0x79   : > { %p437_p3 = scmp.lt.s32.totalorder %s1519_s13, 2  ;;  %p1844_p6 = scmp.ne.s32.totalorder %s1519_s13, 0 }
  0x7b   : > { %s1697_s12 = scalar_select %p437_p3, %s1519_s13, 2 }
  0x7c   : > { %446 = sbr.rel (%p1844_p6) target bundleno = 132 (0x84), region = 80 }
  0x7d   : > { %s439_s18 = scalar_lea.vmem %s1811_s4, %s1697_s12  ;;  %s442_s22 = scalar_lea.vmem %s1812_s5, %s1697_s12 }
  0x81   : > { %v447_v0 = vld [vmem:[#allocation7] sm:$0xff]  ;;  %v448_v1 = vld [vmem:[#allocation7 + $0x8] sm:$0xff]  ;;  %v1440_v2 = vmov 0.0  }
  0x82   : > { %449 = vst [vmem:[#allocation2] sm:$0xff] %v447_v0  ;;  %450 = vst [vmem:[#allocation2 + $0x8] sm:$0xff] %v448_v1 }
  0x83   : > { %451 = vst [vmem:[#allocation12] sm:$0xff] %v1440_v2  ;;  %452 = vst [vmem:[#allocation12 + $0x8] sm:$0xff] %v1440_v2 }
  0x84 PF: > { %v455_v5 = vld [vmem:[#allocation8] sm:$0xff]  ;;  %vm474_vm0 = vcmask 130048   ;;  %v472_v6 = vld [vmem:[%s1687_s29 + $0x78] sm:$0xff]  ;;  %v470_v9 = vld [vmem:[%s1687_s29 + $0x68] sm:$0xff]  ;;  %s473_s19 = sld [smem:[#allocation3 + %s1519_s13]]  ;;  %s1441_s21 = smov 96  }
  0x85   : > { %1068 = vmatprep.mubr.msk.f32.mxu0 %vm474_vm0, %v455_v5  ;;  %v471_v7 = vld [vmem:[%s1687_s29 + $0x70] sm:$0xff]  ;;  %v456_v8 = vld [vmem:[#allocation8 + $0x8] sm:$0xff]  ;;  %1071 = vmatprep.subr.mxu1 %v472_v6  ;;  %v469_v10 = vld [vmem:[%s1687_s29 + $0x60] sm:$0xff]  ;;  %s1442_s27 = smov 32   ;;  %s1443_s16 = smov 64  }
  0x86   : > { %1072 = vmatpush3.msra.mxu1 %v472_v6  ;;  %v468_v11 = vld [vmem:[%s1687_s29 + $0x58] sm:$0xff]  ;;  %v467_v12 = vld [vmem:[%s1687_s29 + $0x50] sm:$0xff]  ;;  %v466_v13 = vld [vmem:[%s1687_s29 + $0x48] sm:$0xff]  ;;  %p1017_p7 = scmp.ne.s32.totalorder %s1519_s13, 2 }
  0x87   : > { %1073 = vmatprep.subr.mxu1 %v471_v7  ;;  %v465_v14 = vld [vmem:[%s1687_s29 + $0x40] sm:$0xff]  ;;  %v464_v15 = vld [vmem:[%s1687_s29 + $0x38] sm:$0xff]  ;;  %v463_v16 = vld [vmem:[%s1687_s29 + $0x30] sm:$0xff]  ;;  %s1444_s20 = smov (!%p1017_p7), 32   ;;  %s1445_s26 = smov (!%p1017_p7), 96  }
  0x88   : > { %1074 = vmatpush3.msra.mxu1 %v471_v7  ;;  %v462_v17 = vld [vmem:[%s1687_s29 + $0x28] sm:$0xff]  ;;  %v461_v18 = vld [vmem:[%s1687_s29 + $0x20] sm:$0xff]  ;;  %v460_v19 = vld [vmem:[%s1687_s29 + $0x18] sm:$0xff]  ;;  %s1446_s28 = smov (!%p1017_p7), 64  }
  0x89   : > { %v1709_v3 = vld [vmem:[#allocation2 + $0x8] sm:$0xff]  ;;  %v453_v4 = vld [vmem:[#allocation2] sm:$0xff]  ;;  %1075 = vmatprep.subr.mxu1 %v470_v9  ;;  %v458_v21 = vld [vmem:[%s1687_s29 + $0x8] sm:$0xff] }
  0x8a   : > { %1064 = vmatprep.subr.mxu0 %v1709_v3  ;;  %1076 = vmatpush3.msra.mxu1 %v470_v9  ;;  %v459_v20 = vld [vmem:[%s1687_s29 + $0x10] sm:$0xff]  ;;  %v457_v22 = vld [vmem:[%s1687_s29] sm:$0xff]  ;;  %s556_s15 = sadd.f32 1.0, %s473_s19  ;;  %v717_v47 = vld [vmem:[%s1693_s30 + $0x78] sm:$0xff] }
  0x8b   : > { %1065 = vmatpush3.msra.mxu0 %v1709_v3  ;;  %1077 = vmatprep.subr.mxu1 %v469_v10  ;;  %v716_v48 = vld [vmem:[%s1693_s30 + $0x70] sm:$0xff]  ;;  %v715_v50 = vld [vmem:[%s1693_s30 + $0x68] sm:$0xff]  ;;  %v714_v51 = vld [vmem:[%s1693_s30 + $0x60] sm:$0xff] }
  0x8c   : > { %1066 = vmatprep.subr.mxu0 %v453_v4  ;;  %1078 = vmatpush3.msra.mxu1 %v469_v10  ;;  %v557_v23 = vstv %s556_s15  ;;  %v713_v52 = vld [vmem:[%s1693_s30 + $0x58] sm:$0xff]  ;;  %v712_v53 = vld [vmem:[%s1693_s30 + $0x50] sm:$0xff]  ;;  %v711_v54 = vld [vmem:[%s1693_s30 + $0x48] sm:$0xff] }
  0x8d   : > { %1067 = vmatpush3.msra.mxu0 %v453_v4  ;;  %1079 = vmatprep.subr.mxu1 %v468_v11  ;;  %v558_v24 = vmul.f32 %v557_v23, %v453_v4  ;;  %v559_v26 = vmul.f32 %v557_v23, %v1709_v3  ;;  %v710_v55 = vld [vmem:[%s1693_s30 + $0x40] sm:$0xff]  ;;  %v709_v56 = vld [vmem:[%s1693_s30 + $0x38] sm:$0xff]  ;;  %v708_v57 = vld [vmem:[%s1693_s30 + $0x30] sm:$0xff] }
  0x8e   : > { %1069 = vmatmul.mubr.msk.f32.vlgmr.msra.gmra.mxu0 %vm474_vm0, %v456_v8  ;;  %1080 = vmatpush3.msra.mxu1 %v468_v11  ;;  %v707_v58 = vld [vmem:[%s1693_s30 + $0x28] sm:$0xff]  ;;  %v706_v59 = vld [vmem:[%s1693_s30 + $0x20] sm:$0xff]  ;;  %v705_v60 = vld [vmem:[%s1693_s30 + $0x18] sm:$0xff] }
  0x8f   : > { %1081 = vmatprep.subr.mxu1 %v467_v12  ;;  %1106 = vmatprep.subr.mxu0 %v717_v47  ;;  %v704_v61 = vld [vmem:[%s1693_s30 + $0x10] sm:$0xff]  ;;  %v703_v62 = vld [vmem:[%s1693_s30 + $0x8] sm:$0xff]  ;;  %v702_v63 = vld [vmem:[%s1693_s30] sm:$0xff] }
  0x90   : > { %1082 = vmatpush3.msra.mxu1 %v467_v12  ;;  %1107 = vmatpush3.msra.mxu0 %v717_v47  ;;  %v638_v23 = vld [vmem:[%s442_s22] sm:$0x1] }
  0x91   : > { %1083 = vmatprep.subr.mxu1 %v466_v13  ;;  %1108 = vmatprep.subr.mxu0 %v716_v48 }
  0x92   : > { %1084 = vmatpush3.msra.mxu1 %v466_v13  ;;  %1109 = vmatpush3.msra.mxu0 %v716_v48 }
  0x93   : > { %1085 = vmatprep.subr.mxu1 %v465_v14  ;;  %1110 = vmatprep.subr.mxu0 %v715_v50 }
  0x94   : > { %1086 = vmatpush3.msra.mxu1 %v465_v14  ;;  %1111 = vmatpush3.msra.mxu0 %v715_v50 }
  0x95   : > { %1087 = vmatprep.subr.mxu1 %v464_v15  ;;  %1112 = vmatprep.subr.mxu0 %v714_v51 }
  0x96   : > { %1088 = vmatpush3.msra.mxu1 %v464_v15  ;;  %1113 = vmatpush3.msra.mxu0 %v714_v51 }
  0x97   : > { %1089 = vmatprep.subr.mxu1 %v463_v16  ;;  %1114 = vmatprep.subr.mxu0 %v713_v52 }
  0x98   : > { %1090 = vmatpush3.msra.mxu1 %v463_v16  ;;  %1115 = vmatpush3.msra.mxu0 %v713_v52 }
  0x99   : > { %1091 = vmatprep.subr.mxu1 %v462_v17  ;;  %1116 = vmatprep.subr.mxu0 %v712_v53 }
  0x9a   : > { %1092 = vmatpush3.msra.mxu1 %v462_v17  ;;  %1117 = vmatpush3.msra.mxu0 %v712_v53  ;;  %v683_v17 = vlaneseq }
  0x9b   : > { %1093 = vmatprep.subr.mxu1 %v461_v18  ;;  %1118 = vmatprep.subr.mxu0 %v711_v54 }
  0x9c   : > { %1094 = vmatpush3.msra.mxu1 %v461_v18  ;;  %1119 = vmatpush3.msra.mxu0 %v711_v54  ;;  %v684_v18 = vshrl.u32 %v683_v17, 7 }
  0x9d   : > { %1095 = vmatprep.subr.mxu1 %v460_v19  ;;  %1120 = vmatprep.subr.mxu0 %v710_v55 }
  0x9e   : > { %1096 = vmatpush3.msra.mxu1 %v460_v19  ;;  %1121 = vmatpush3.msra.mxu0 %v710_v55  ;;  %v637_v19 = vld [vmem:[%s439_s18] sm:$0x1] }
  0x9f   : > { %1097 = vmatprep.subr.mxu1 %v459_v20  ;;  %1122 = vmatprep.subr.mxu0 %v709_v56 }
  0xa0   : > { %1098 = vmatpush3.msra.mxu1 %v459_v20  ;;  %1123 = vmatpush3.msra.mxu0 %v709_v56  ;;  %v1762_v20 = vsub.s32 0, %v684_v18 }
  0xa1   : > { %1099 = vmatprep.subr.mxu1 %v458_v21  ;;  %1124 = vmatprep.subr.mxu0 %v708_v57 }
  0xa2   : > { %1100 = vmatpush3.msra.mxu1 %v458_v21  ;;  %1125 = vmatpush3.msra.mxu0 %v708_v57 }
  0xa3   : > { %1101 = vmatprep.subr.mxu1 %v457_v22  ;;  %1126 = vmatprep.subr.mxu0 %v707_v58 }
  0xa4   : > { %1102 = vmatpush3.msra.mxu1 %v457_v22  ;;  %1127 = vmatpush3.msra.mxu0 %v707_v58 }
  0xa5   : > { %1128 = vmatprep.subr.mxu0 %v706_v59 }
  0xa6   : > { %1129 = vmatpush3.msra.mxu0 %v706_v59 }
  0xa7   : > { %1130 = vmatprep.subr.mxu0 %v705_v60 }
  0xa8   : > { %1131 = vmatpush3.msra.mxu0 %v705_v60 }
  0xa9   : > { %1132 = vmatprep.subr.mxu0 %v704_v61 }
  0xaa   : > { %1133 = vmatpush3.msra.mxu0 %v704_v61 }
  0xab   : > { %1134 = vmatprep.subr.mxu0 %v703_v62 }
  0xac   : > { %1135 = vmatpush3.msra.mxu0 %v703_v62 }
  0xad   : > { %1136 = vmatprep.subr.mxu0 %v702_v63 }
  0xae   : > { %1137 = vmatpush3.msra.mxu0 %v702_v63 }
 0x14e   : > { %v1070_v25 = vpop.f32.mrf.mxu0 }
 0x14f   : > { %v561_v29 = vadd.f32 %v1070_v25, %v559_v26 }
 0x150   : > { %v547_v27 = vpop.f32.mrf.mxu0 }
 0x151   : > { %v560_v28 = vadd.f32 %v558_v24, %v547_v27 }
 0x153   : > { %1103 = vmatprep.mubr.f32.mxu1 %v560_v28 }
 0x154   : > { %1104 = vmatmul.mubr.f32.vlgmr.msra.gmra.mxu1 %v561_v29 }
 0x214   : > { %v1731_v30 = vpop.f32.mrf.mxu1 }
 0x215   : > { %v647_v32 = vmul.f32 %v1731_v30, %v1731_v30 }
 0x216   : > { %v1733_v31 = vpop.f32.mrf.mxu1 }
 0x217   : > { %v639_v33 = vadd.f32 %v1731_v30, %v1733_v31  ;;  %v646_v34 = vmul.f32 %v1733_v31, %v1733_v31 }
 0x219   : > { %v640_v35 = vrot.slane %v639_v33, 4  ;;  %v648_v36 = vadd.f32 %v647_v32, %v646_v34 }
 0x21b   : > { %v641_v37 = vadd.f32 %v640_v35, %v639_v33  ;;  %v649_v38 = vrot.slane %v648_v36, 4 }
 0x21d   : > { %v642_v39 = vrot.slane %v641_v37, 2  ;;  %v650_v40 = vadd.f32 %v649_v38, %v648_v36  ;;  %v701_v36 = vld [vmem:[#allocation12 + $0x8] sm:$0xff]  ;;  %v700_v38 = vld [vmem:[#allocation12] sm:$0xff] }
 0x21f   : > { %v643_v41 = vadd.f32 %v642_v39, %v641_v37  ;;  %v651_v42 = vrot.slane %v650_v40, 2 }
 0x221   : > { %v644_v43 = vrot.slane %v643_v41, 1  ;;  %v652_v44 = vadd.f32 %v651_v42, %v650_v40 }
 0x223   : > { %v645_v45 = vadd.f32 %v644_v43, %v643_v41  ;;  %v653_v46 = vrot.slane %v652_v44, 1 }
 0x225   : > { %661 = vrot.lane.b32.xlu1 %v645_v45, %s1441_s21  ;;  %655 = vrot.lane.b32.xlu0 %v645_v45, %s1442_s27  ;;  %v654_v49 = vadd.f32 %v653_v46, %v652_v44 }
 0x229   : > { %664 = vrot.lane.b32.xlu1 %v654_v49, %s1442_s27  ;;  %658 = vrot.lane.b32.xlu0 %v645_v45, %s1443_s16 }
 0x22d   : > { %670 = vrot.lane.b32.xlu1 %v654_v49, %s1441_s21  ;;  %667 = vrot.lane.b32.xlu0 %v654_v49, %s1443_s16 }
 0x297   : > { %v662_v0 = vpop.permute.xlu1 %661  ;;  %v656_v1 = vpop.permute.xlu0 %655 }
 0x298   : > { %v657_v2 = vadd.f32 %v656_v1, %v645_v45 }
 0x29b   : > { %v665_v3 = vpop.permute.xlu1 %664  ;;  %v659_v4 = vpop.permute.xlu0 %658 }
 0x29c   : > { %v660_v5 = vadd.f32 %v659_v4, %v657_v2  ;;  %v666_v6 = vadd.f32 %v665_v3, %v654_v49 }
 0x29e   : > { %v663_v7 = vadd.f32 %v662_v0, %v660_v5 }
 0x29f   : > { %v668_v8 = vpop.permute.xlu0 %667  ;;  %v671_v11 = vpop.permute.xlu1 %670 }
 0x2a0   : > { %v673_v9 = vmul.f32 0.015625, %v663_v7  ;;  %v669_v10 = vadd.f32 %v668_v8, %v666_v6 }
 0x2a2   : > { %v672_v12 = vadd.f32 %v671_v11, %v669_v10  ;;  %v675_v13 = vmul.f32 %v673_v9, %v673_v9 }
 0x2a4   : > { %v674_v14 = vmul.f32 0.015625, %v672_v12 }
 0x2a6   : > { %v676_v15 = vsub.f32 %v674_v14, %v675_v13 }
 0x2a8   : > { %v677_v16 = vadd.f32 1e-05, %v676_v15 }
 0x2aa   : > { %1234 = vrsqrt.f32 %v677_v16 }
 0x2b7   : > { %v1235_v21 = vpop.eup %1234 }
 0x2b8   : > { %v679_v22 = vmul.f32 %v1235_v21, %v637_v19 }
 0x2ba   : > { %v680_v24 = vmul.f32 %v679_v22, %v673_v9  ;;  %v686_v25 = vrot.slane %v679_v22, %v1762_v20 }
 0x2bc   : > { %v681_v26 = vsub.f32 %v638_v23, %v680_v24  ;;  %v688_v27 = vmul.f32 %v686_v25, %v1733_v31  ;;  %v689_v29 = vmul.f32 %v1731_v30, %v686_v25 }
 0x2be   : > { %v694_v28 = vrot.slane %v681_v26, %v1762_v20 }
 0x2c0   : > { %v696_v32 = vadd.f32 %v694_v28, %v688_v27  ;;  %v697_v33 = vadd.f32 %v694_v28, %v689_v29 }
 0x2c2   : > { %v698_v34 = vmax.f32 %v696_v32, 0.0  ;;  %v699_v35 = vmax.f32 %v697_v33, 0.0 }
 0x2c4   : > { %1138 = vmatprep.mubr.f32.mxu0 %v698_v34  ;;  %797 = vst [vmem:[#allocation2] sm:$0xff] %v698_v34  ;;  %798 = vst [vmem:[#allocation2 + $0x8] sm:$0xff] %v699_v35 }
 0x2c5   : > { %1139 = vmatmul.mubr.f32.vlgmr.msra.gmra.mxu0 %v699_v35 }
 0x385   : > { %v1140_v37 = vpop.f32.mrf.mxu0 }
 0x386   : > { %v794_v39 = vadd.f32 %v1140_v37, %v701_v36  ;;  %802 = sbr.rel (%p1017_p7) target bundleno = 1086 (0x43e), region = 84 }
 0x387   : > { %v784_v40 = vpop.f32.mrf.mxu0 }
 0x388   : > { %796 = vst [vmem:[#allocation12 + $0x8] sm:$0xff] %v794_v39  ;;  %v793_v41 = vadd.f32 %v784_v40, %v700_v38 }
 0x38a   : > { %795 = vst [vmem:[#allocation12] sm:$0xff] %v793_v41 }
 0x38b   : > { %v805_v11 = vld [vmem:[%s1814_s7] sm:$0x1] }
 0x38c   : > { %v806_v14 = vld [vmem:[%s1815_s8] sm:$0x1] }
 0x38f   : > { %v804_v31 = vld [vmem:[#allocation12 + $0x8] sm:$0xff] }
 0x390   : > { %v815_v44 = vmul.f32 %v804_v31, %v804_v31 }
 0x391   : > { %v803_v30 = vld [vmem:[#allocation12] sm:$0xff] }
 0x392   : > { %v807_v42 = vadd.f32 %v804_v31, %v803_v30  ;;  %v814_v43 = vmul.f32 %v803_v30, %v803_v30 }
 0x394   : > { %v808_v45 = vrot.slane %v807_v42, 4  ;;  %v816_v46 = vadd.f32 %v815_v44, %v814_v43 }
 0x396   : > { %v809_v47 = vadd.f32 %v808_v45, %v807_v42  ;;  %v817_v48 = vrot.slane %v816_v46, 4 }
 0x398   : > { %v810_v49 = vrot.slane %v809_v47, 2  ;;  %v818_v50 = vadd.f32 %v817_v48, %v816_v46 }
 0x39a   : > { %v811_v51 = vadd.f32 %v810_v49, %v809_v47  ;;  %v819_v52 = vrot.slane %v818_v50, 2 }
 0x39c   : > { %v812_v53 = vrot.slane %v811_v51, 1  ;;  %v820_v54 = vadd.f32 %v819_v52, %v818_v50 }
 0x39e   : > { %v813_v55 = vadd.f32 %v812_v53, %v811_v51  ;;  %v821_v56 = vrot.slane %v820_v54, 1 }
 0x3a0   : > { %823 = vrot.lane.b32.xlu0 %v813_v55, %s1444_s20  ;;  %829 = vrot.lane.b32.xlu1 %v813_v55, %s1445_s26  ;;  %v822_v57 = vadd.f32 %v821_v56, %v820_v54 }
 0x3a4   : > { %826 = vrot.lane.b32.xlu0 %v813_v55, %s1446_s28  ;;  %832 = vrot.lane.b32.xlu1 %v822_v57, %s1444_s20 }
 0x3a8   : > { %835 = vrot.lane.b32.xlu0 %v822_v57, %s1446_s28  ;;  %838 = vrot.lane.b32.xlu1 %v822_v57, %s1445_s26 }
 0x412   : > { %v824_v58 = vpop.permute.xlu0 %823  ;;  %v830_v59 = vpop.permute.xlu1 %829 }
 0x413   : > { %v825_v60 = vadd.f32 %v824_v58, %v813_v55 }
 0x416   : > { %v827_v61 = vpop.permute.xlu0 %826  ;;  %v833_v62 = vpop.permute.xlu1 %832 }
 0x417   : > { %v828_v63 = vadd.f32 %v827_v61, %v825_v60  ;;  %v834_v0 = vadd.f32 %v833_v62, %v822_v57 }
 0x419   : > { %v831_v1 = vadd.f32 %v830_v59, %v828_v63 }
 0x41a   : > { %v836_v2 = vpop.permute.xlu0 %835  ;;  %v839_v3 = vpop.permute.xlu1 %838 }
 0x41b   : > { %v841_v4 = vmul.f32 0.015625, %v831_v1  ;;  %v837_v5 = vadd.f32 %v836_v2, %v834_v0 }
 0x41d   : > { %v840_v6 = vadd.f32 %v839_v3, %v837_v5  ;;  %v843_v8 = vmul.f32 %v841_v4, %v841_v4 }
 0x41f   : > { %v842_v7 = vmul.f32 0.015625, %v840_v6 }
 0x421   : > { %v844_v9 = vsub.f32 %v842_v7, %v843_v8 }
 0x423   : > { %v845_v10 = vadd.f32 1e-05, %v844_v9 }
 0x425   : > { %1236 = vrsqrt.f32 %v845_v10 }
 0x432   : > { %v1237_v12 = vpop.eup %1236 }
 0x433   : > { %v847_v13 = vmul.f32 %v1237_v12, %v805_v11 }
 0x435   : > { %v848_v15 = vmul.f32 %v847_v13, %v841_v4  ;;  %v854_v16 = vrot.slane %v847_v13, %v1762_v20 }
 0x437   : > { %v849_v17 = vsub.f32 %v806_v14, %v848_v15  ;;  %v856_v18 = vmul.f32 %v854_v16, %v803_v30  ;;  %v857_v19 = vmul.f32 %v854_v16, %v804_v31 }
 0x439   : > { %v862_v21 = vrot.slane %v849_v17, %v1762_v20 }
 0x43b   : > { %v864_v22 = vadd.f32 %v862_v21, %v856_v18  ;;  %v865_v23 = vadd.f32 %v862_v21, %v857_v19 }
 0x43d   : > { %866 = vst [vmem:[#allocation12] sm:$0xff] %v864_v22  ;;  %867 = vst [vmem:[#allocation12 + $0x8] sm:$0xff] %v865_v23 }
 0x43e PF: > { %p1185_p11 = scmp.eq.s32.totalorder %s1519_s13, 2  ;;  %s1447_s17 = smov [#allocation12]  }
 0x43f   : > { %s874_s18 = sshll.u32 %s1447_s17, 4  ;;  %s875_s18 = int_to_ptr.vmem [resolvable:$true] %s874_s18 }
 0x440   : > { %s1357_s1 = scalar_lea.vmem %s875_s18, 256  ;;  %p1364_p2 = scmp.lt.s32.totalorder %s875_s18, %s875_s18 }
 0x441   : > { %p1358_p4 = scmp.ne.s32.totalorder %s875_s18, %s1357_s1  ;;  %p1365_p8 = scmp.lt.s32.totalorder %s1357_s1, %s1357_s1 }
 0x443   : > { %p1359_p9 = pnand %p1358_p4, %p1185_p11  ;;  %p1366_p10 = por %p1365_p8, %p1364_p2 }
 0x445   : > { %p1360_p5 = pneg %p1359_p9 }
 0x447   : > { %p1367_p1 = pnand %p1366_p10, %p1360_p5 }
 0x449   : > { %1370 = shalt.err (!%p1367_p1)
}
 0x44a   : > { %s1448_s23 = smov 128   ;;  %s1449_s22 = smov 8  }
 0x44b   : > { %s1845_s21 = sld [smem:[#allocation22_spill]] }
 0x451   : > { %1158 = dma.vmem_to_hbm [thread:$0]  (%p1185_p11), %s875_s18, 256, %s1845_s21, [#allocation5], %s1448_s23, %s1448_s23, %s1449_s22  }
 0x452   : > { %1414 = dma.done.wait (%p1185_p11), [#allocation5], 256  }
 0x453   : > { %1416 = vsyncadd (%p1185_p11), [#allocation5], 4294967040 }
 0x454 PF: > { %s1846_s12 = sld [smem:[#allocation19_spill]]  ;;  %s1849_s30 = smov %s1423_s10 }
 0x455   : > { %s1847_s27 = sld [smem:[#allocation18_spill]] }
 0x456   : > { %s1848_s11 = sld [smem:[#allocation20_spill]] }
 0x45a   : > { %p20_p12 = scmp.ge.s32.totalorder %s1846_s12, 5  }
 0x45b   : > { %s1850_s10 = smov %s1847_s27 }
 0x45c   :  { %22 = sbr.rel (!%p20_p12) target bundleno = 8 (0x8), region = 130 }
 0x461   :  { %890 = vsyncpa [#allocation4], 1 }
 0x462   :  { %892 = vsyncpa [#allocation4 + $0x1], 1 }
 0x463   :  { %893 = vsyncpa [#allocation9], 1 }
 0x464   :  { %894 = vsyncpa [#allocation5], 1 }
 0x465   :  { %896 = vsyncpa [#allocation5 + $0x1], 1 }
 0x466   :  { %897 = vsyncpa [#allocation6], 1 }
 0x467   :  { %899 = vsyncpa [#allocation6 + $0x1], 1 }

</bundles_post_ra>
